<compile_context>
chip_gen: v5e
topology: v5e:2x2
jax: 0.10.0
libtpu: 0.0.40
codegen_flags: <defaults>
</compile_context>

<pallas_src>
import jax
import jax.numpy as jnp
from jax.experimental import pallas as pl
from jax.experimental.pallas import tpu as pltpu

LANE = 128
TARGET_BLOCK_BYTES = 2 * 1024 * 1024      # ~2 MiB per buffer (safe on all gens)
VMEM_LIMIT_BYTES = 32 * 1024 * 1024       # headroom over default scoped VMEM


def _mish_kernel(x_ref, o_ref):
    x = x_ref[...].astype(jnp.float32)
    t = jnp.exp(-jnp.abs(x))                        # single EUP transcendental
    pos = x >= 0.0
    num = jnp.where(pos, 1.0 + 2.0 * t, t * (t + 2.0))
    den = num + jnp.where(pos, 2.0 * t * t, 2.0)    # den in (1, 5], never 0/inf
    r = pl.reciprocal(den, approx=True)             # EUP vrcp seed (~12 bit)
    r = r * (2.0 - den * r)                         # Newton step 1 (VPU)
    r = r * (2.0 - den * r)                         # Newton step 2 -> f32 exact
    o_ref[...] = (x * num * r).astype(o_ref.dtype)


def _row_tile(rows: int, cols: int, itemsize: int) -> int:
    """Pick a row tile: ~2 MiB blocks, dtype-packed sublane granularity,
    and >= 2 grid steps whenever possible (v7x megacore)."""
    sub = 8 * max(1, 4 // itemsize)        # 8 for f32, 16 for bf16, 32 for int8
    if rows <= sub:
        return rows                         # full-extent block (always legal)
    padded_cols = pl.cdiv(cols, LANE) * LANE
    rt = (TARGET_BLOCK_BYTES // (padded_cols * itemsize)) // sub * sub
    rt = max(sub, rt)
    if rows >= 2 * sub:
        # never fewer than 2 grid steps so both v7x TensorCores get work
        rt = min(rt, pl.cdiv(pl.cdiv(rows, 2), sub) * sub)
    return rt if rt < rows else rows


def _mish_2d(x2d: jax.Array) -> jax.Array:
    rows, cols = x2d.shape
    itemsize = x2d.dtype.itemsize
    rt = _row_tile(rows, cols, itemsize)
    grid = (pl.cdiv(rows, rt),)             # ragged last block handled by Pallas
    n = rows * cols
    cost = pl.CostEstimate(
        flops=20 * n, transcendentals=2 * n, bytes_accessed=2 * n * itemsize)
    return pl.pallas_call(
        _mish_kernel,
        out_shape=jax.ShapeDtypeStruct((rows, cols), x2d.dtype),
        grid_spec=pltpu.PrefetchScalarGridSpec(
            num_scalar_prefetch=0,
            grid=grid,
            in_specs=[pl.BlockSpec((rt, cols), lambda i: (i, 0))],
            out_specs=pl.BlockSpec((rt, cols), lambda i: (i, 0)),
        ),
        compiler_params=pltpu.CompilerParams(
            dimension_semantics=("parallel",),
            vmem_limit_bytes=VMEM_LIMIT_BYTES,
        ),
        cost_estimate=cost,
    )(x2d)


def mish(x: jax.Array) -> jax.Array:
    if x.size == 0:
        return x
    n = int(x.size)
    shape = x.shape

    if n % LANE == 0:
        # Typical NCHW activation sizes: zero-copy reshape to a perfectly
        # lane-dense (rows, 128) slab.
        return _mish_2d(x.reshape(-1, LANE)).reshape(shape)

    if x.ndim >= 2 and x.shape[-1] <= 16384:
        # Total size not a multiple of 128: keep the true last dim on the
        # lanes (block last dim == full dim is legal for any width), so there
        # is NO jnp.pad / slice HBM round trip — traffic stays at 2n bytes.
        return _mish_2d(x.reshape(-1, x.shape[-1])).reshape(shape)

    # Rare fallback (0-D / 1-D misaligned, or absurdly wide last dim): pad to a
    # lane multiple.  # TODO(synk): avoid even this pad via a manual-DMA tail.
    flat = x.reshape(-1)
    pad = (-n) % LANE
    flat = jnp.pad(flat, (0, pad))
    out = _mish_2d(flat.reshape(-1, LANE)).reshape(-1)[:n]
    return out.reshape(shape)


def _mish_ref(x):
    xf = x.astype(jnp.float32)
    return (xf * jnp.tanh(jax.nn.softplus(xf))).astype(x.dtype)


if __name__ == "__main__":
    key = jax.random.PRNGKey(0)
    x = jax.random.normal(key, (2, 4, 16, 16), dtype=jnp.float32) * 3.0

    y = mish(x)
    jax.block_until_ready(y)

    y_ref = _mish_ref(x)
    assert y.shape == x.shape and y.dtype == x.dtype
    assert jnp.allclose(y, y_ref, atol=1e-5, rtol=1e-5)

    # Extra sanity checks: multi-step aligned grid, misaligned (trailing-dim
    # path), 1-D pad fallback, and bf16 I/O.
    checks = [
        ((2, 4, 200, 200), jnp.float32),   # aligned, multi-step grid
        ((3, 5, 37, 41), jnp.float32),     # size % 128 != 0 -> trailing-dim path
        ((37,), jnp.float32),              # 1-D misaligned -> pad fallback
        ((2, 4, 16, 16), jnp.bfloat16),    # bf16 I/O (halved HBM bytes)
    ]
    for i, (shape, dt) in enumerate(checks):
        xt = (jax.random.normal(jax.random.PRNGKey(i + 1), shape,
                                dtype=jnp.float32) * 4.0).astype(dt)
        yt = mish(xt)
        jax.block_until_ready(yt)
        assert yt.shape == xt.shape and yt.dtype == xt.dtype
        tol = 2e-2 if dt == jnp.bfloat16 else 1e-5
        assert jnp.allclose(yt.astype(jnp.float32),
                            _mish_ref(xt).astype(jnp.float32),
                            atol=tol, rtol=tol)

    print("KERNEL_OK")
</pallas_src>

<mosaic_0001>
module attributes {stable_mosaic.version = 11 : i64} {
  func.func @_mish_kernel(%arg0: i32, %arg1: memref<8x128xf32, #tpu.memory_space<vmem>>, %arg2: memref<8x128xf32, #tpu.memory_space<vmem>>) attributes {dimension_semantics = [#tpu.dimension_semantics<parallel>], iteration_bounds = array<i64: 2>, scalar_prefetch = 0 : i64, scratch_operands = 0 : i64, tpu.core_type = #tpu.core_type<tc>, window_params = [{transform_indices = @transform_0, window_bounds = array<i64: 8, 128>}, {transform_indices = @transform_1, window_bounds = array<i64: 8, 128>}]} {
    %c0 = arith.constant 0 : index
    %c0_0 = arith.constant 0 : index
    %0 = vector.load %arg1[%c0, %c0_0] : memref<8x128xf32, #tpu.memory_space<vmem>>, vector<8x128xf32>
    %1 = math.absf %0 : vector<8x128xf32>
    %cst = arith.constant 0.000000e+00 : f32
    %2 = vector.broadcast %cst : f32 to vector<8x128xf32>
    %3 = arith.subf %2, %1 : vector<8x128xf32>
    %4 = math.exp %3 : vector<8x128xf32>
    %cst_1 = arith.constant 0.000000e+00 : f32
    %5 = vector.broadcast %cst_1 : f32 to vector<8x128xf32>
    %6 = arith.cmpf oge, %0, %5 : vector<8x128xf32>
    %cst_2 = arith.constant 2.000000e+00 : f32
    %7 = vector.broadcast %cst_2 : f32 to vector<8x128xf32>
    %8 = arith.mulf %7, %4 : vector<8x128xf32>
    %cst_3 = arith.constant 1.000000e+00 : f32
    %9 = vector.broadcast %cst_3 : f32 to vector<8x128xf32>
    %10 = arith.addf %9, %8 : vector<8x128xf32>
    %cst_4 = arith.constant 2.000000e+00 : f32
    %11 = vector.broadcast %cst_4 : f32 to vector<8x128xf32>
    %12 = arith.addf %4, %11 : vector<8x128xf32>
    %13 = arith.mulf %4, %12 : vector<8x128xf32>
    %14 = arith.select %6, %10, %13 : vector<8x128xi1>, vector<8x128xf32>
    %cst_5 = arith.constant 2.000000e+00 : f32
    %15 = vector.broadcast %cst_5 : f32 to vector<8x128xf32>
    %16 = arith.mulf %15, %4 : vector<8x128xf32>
    %17 = arith.mulf %16, %4 : vector<8x128xf32>
    %cst_6 = arith.constant 2.000000e+00 : f32
    %18 = vector.broadcast %cst_6 : f32 to vector<8x128xf32>
    %19 = arith.select %6, %17, %18 : vector<8x128xi1>, vector<8x128xf32>
    %20 = arith.addf %14, %19 : vector<8x128xf32>
    %21 = tpu.reciprocal %20 {approx = true} : vector<8x128xf32> -> vector<8x128xf32>
    %22 = arith.mulf %20, %21 : vector<8x128xf32>
    %cst_7 = arith.constant 2.000000e+00 : f32
    %23 = vector.broadcast %cst_7 : f32 to vector<8x128xf32>
    %24 = arith.subf %23, %22 : vector<8x128xf32>
    %25 = arith.mulf %21, %24 : vector<8x128xf32>
    %26 = arith.mulf %20, %25 : vector<8x128xf32>
    %cst_8 = arith.constant 2.000000e+00 : f32
    %27 = vector.broadcast %cst_8 : f32 to vector<8x128xf32>
    %28 = arith.subf %27, %26 : vector<8x128xf32>
    %29 = arith.mulf %25, %28 : vector<8x128xf32>
    %30 = arith.mulf %0, %14 : vector<8x128xf32>
    %31 = arith.mulf %30, %29 : vector<8x128xf32>
    %c0_9 = arith.constant 0 : index
    %c0_10 = arith.constant 0 : index
    %32 = vector.load %arg2[%c0_9, %c0_10] : memref<8x128xf32, #tpu.memory_space<vmem>>, vector<8x128xf32>
    tpu.vector_store %arg2[%c0_9, %c0_10], %31 {strides = array<i32>} : memref<8x128xf32, #tpu.memory_space<vmem>>, vector<8x128xf32>,
    return
  }
  func.func @transform_0(%arg0: i32) -> (i32, i32) {
    %c0_i32 = arith.constant 0 : i32
    %c0_i32_0 = arith.constant 0 : i32
    return %arg0, %c0_i32 : i32, i32
  }
  func.func @transform_1(%arg0: i32) -> (i32, i32) {
    %c0_i32 = arith.constant 0 : i32
    %c0_i32_0 = arith.constant 0 : i32
    return %arg0, %c0_i32 : i32, i32
  }
}

</mosaic_0001>

<bundles_post_ra>
// kernel: tpu_custom_call.1
= control target key start
LH: loop header
LB: loop body
LE: loop exit
PB: predicated region body
PF: predicated region fallthrough
CT: control target
= control target key end

     0   :  { %6 = vsyncpa [#allocation3], 0  ;;  %s541_s0 = inlined_call_operand.hbm [shape: f32[16,128], index: 0, kind: input, shape index: {}]   ;;  %s542_s1 = inlined_call_operand.hbm [shape: f32[16,128], index: 1, kind: output, shape index: {}]  }
   0x1   :  { %8 = vsyncpa [#allocation3 + $0x1], 0 }
   0x2   :  { %9 = vsyncpa [#allocation4], 0 }
   0x3   :  { %11 = vsyncpa [#allocation4 + $0x1], 0  ;;  %s414_s6 = smov 0   ;;  %s416_s7 = smov 0  }
   0x4   :  { %s418_s8 = smov 0   ;;  %s420_s9 = smov 0  }
   0x5 LB: > { %s435_s10 = sadd.s32 4294967295, %s402_s9   ;;  %s244_s11 = sadd.s32 4294967294, %s402_s9   ;;  %s402_s9 = sphi %s420_s9, %s552_s9   ;;  %s398_s8 = sphi %s418_s8, %s551_s8   ;;  %s394_s7 = sphi %s416_s7, %s550_s7   ;;  %s390_s6 = sphi %s414_s6, %s549_s6  }
   0x6   : > { %s439_s12 = sadd.s32 1, %s402_s9   ;;  %s24_s13 = sadd.s32 1, %s398_s8 }
   0x7   : > { %s21_s14 = ssub.s32 %s402_s9, %s439_s12  ;;  %p31_p0 = scmp.ne.s32.totalorder %s398_s8, %s394_s7 }
   0x8   : > { %p22_p1 = scmp.eq.s32.totalorder %s21_s14, 0  ;;  %p32_p2 = scmp.eq.s32.totalorder %s402_s9, 0 }
   0x9   : > { %p37_p3 = scmp.ne.s32.totalorder %s394_s7, %s390_s6  ;;  %p38_p4 = scmp.eq.s32.totalorder %s435_s10, 0 }
   0xa   : > { %s451_s15 = scalar_select %p22_p1, %s398_s8, %s24_s13  }
   0xb   : > { %p453_p5 = por %p32_p2, %p31_p0  ;;  %p457_p6 = por %p38_p4, %p37_p3 }
   0xc   : > { %p61_p7 = scmp.eq.s32.totalorder %s435_s10, 1  ;;  %p67_p8 = scmp.eq.s32.totalorder %s244_s11, 1 }
   0xd   : > { %p268_p10 = scmp.lt.s32.totalorder %s402_s9, 2  ;;  %s87_s20 = sand.u32 1, %s398_s8  }
   0xe   : > { %p464_p11 = por %p61_p7, %p31_p0  ;;  %p468_p12 = por %p67_p8, %p37_p3 }
   0xf   : > { %s248_s21 = sshll.u32 %s402_s9, 3  ;;  %s247_s22 = sshll.u32 %s87_s20, 3 }
  0x10   : > { %s95_s25 = scalar_lea.hbm %s541_s0, %s248_s21  ;;  %s91_s27 = scalar_lea.vmem [#allocation2], %s247_s22 }
  0x11   : > { %s97_s26 = sshll.u32 %s95_s25, 4  ;;  %s99_s28 = sshll.u32 %s91_s27, 4  ;;  %s98_s26 = int_to_ptr.hbm [resolvable:$true] %s97_s26  ;;  %s100_s28 = int_to_ptr.vmem [resolvable:$true] %s99_s28 }
  0x12   : > { %p479_p13 = pnand %p268_p10, %p453_p5  ;;  %p249_p0 = scmp.ge.s32.totalorder %s402_s9, 1 }
  0x13   : > { %p104_p1 = scmp.lt.s32.totalorder %s402_s9, 3  ;;  %s88_s30 = scalar_lea.sflag [#allocation3], %s87_s20 }
  0x14   : > { %s306_s2 = sshra.s32 %s98_s26, 4  ;;  %p310_p3 = pneg %p479_p13  ;;  %s307_s2 = int_to_ptr.hbm [resolvable:$true] %s306_s2 }
  0x15   : > { %s308_s3 = scalar_lea.hbm %s307_s2, 8  ;;  %s313_s11 = scalar_lea.hbm %s541_s0, 16 }
  0x16   : > { %p309_p2 = scmp.ne.s32.totalorder %s307_s2, %s308_s3  ;;  %p314_p5 = scmp.lt.s32.totalorder %s307_s2, %s541_s0 }
  0x17   : > { %p315_p8 = scmp.lt.s32.totalorder %s313_s11, %s308_s3 }
  0x18   : > { %p311_p4 = pnand %p310_p3, %p309_p2 }
  0x19   : > { %p316_p10 = por %p315_p8, %p314_p5 }
  0x1a   : > { %p312_p7 = pneg %p311_p4 }
  0x1c   : > { %p317_p9 = pnand %p316_p10, %p312_p7 }
  0x1e   : > { %320 = shalt.err (!%p317_p9)
}
  0x1f   : > { %263 = dma.hbm_to_vmem [thread:$0]  (!%p479_p13), %s98_s26, 128, %s100_s28, %s88_s30  }
  0x20   : > { %p105_p2 = pnand %p249_p0, %p104_p1 }
  0x21   : > { %s500_s16 = sand.u32 (!%p105_p2), 1, %s394_s7  }
  0x22   : > { %108 = sbr.rel (%p105_p2) target bundleno = 85 (0x55), region = 24  ;;  %s250_s20 = sshll.u32 (!%p105_p2), %s500_s16, 3 }
  0x23   : > { %s111_s21 = scalar_lea.sflag (!%p105_p2), [#allocation3], %s500_s16  ;;  %s114_s22 = scalar_lea.vmem (!%p105_p2), [#allocation2], %s250_s20 }
  0x27   : > { %381 = dma.done.wait (%p457_p6), %s111_s21, 128  }
  0x28   : > { %383 = vsyncadd (%p457_p6), %s111_s21, 4294967168  ;;  %v134_v0 = vld [vmem:[%s114_s22] sm:$0xff]  ;;  %s253_s17 = sshll.u32 %s435_s10, 3  ;;  %s133_s26 = scalar_lea.vmem [#allocation5], %s250_s20 }
  0x29   : > { %v135_v1 = vand.u32 2147483647, %v134_v0  ;;  %vm139_vm0 = vcmp.ge.f32.partialorder %v134_v0, 0.0  ;;  %s169_s25 = scalar_lea.hbm %s542_s1, %s253_s17  ;;  %s171_s27 = sshll.u32 %s133_s26, 4  ;;  %s172_s27 = int_to_ptr.vmem [resolvable:$true] %s171_s27 }
  0x2a   : > { %s173_s28 = sshll.u32 %s169_s25, 4  ;;  %s159_s29 = scalar_lea.sflag [#allocation4], %s500_s16  ;;  %s174_s28 = int_to_ptr.hbm [resolvable:$true] %s173_s28 }
  0x2b   : > { %v136_v2 = vsub.f32 0.0, %v135_v1  ;;  %s350_s30 = sshra.s32 %s174_s28, 4  ;;  %s356_s4 = scalar_lea.hbm %s542_s1, 16  ;;  %s351_s30 = int_to_ptr.hbm [resolvable:$true] %s350_s30 }
  0x2c   : > { %s352_s10 = scalar_lea.hbm %s351_s30, 8  ;;  %p357_p0 = scmp.lt.s32.totalorder %s351_s30, %s542_s1 }
  0x2d   : > { %v137_v3 = vmul.f32 1.442695, %v136_v2  ;;  %p353_p6 = scmp.ne.s32.totalorder %s351_s30, %s352_s10  ;;  %p358_p1 = scmp.lt.s32.totalorder %s356_s4, %s352_s10 }
  0x2f   : > { %302 = vpow2.f32 %v137_v3  ;;  %p354_p9 = pnand %p353_p6, %p464_p11  ;;  %p359_p3 = por %p358_p1, %p357_p0 }
  0x31   : > { %p355_p13 = pneg %p354_p9 }
  0x33   : > { %p360_p4 = pnand %p359_p3, %p355_p13 }
  0x35   : > { %v303_v4 = vpop.eup %302 }
  0x36   : > { %v140_v5 = vmul.f32 2.0, %v303_v4  ;;  %v142_v6 = vadd.f32 2.0, %v303_v4 }
  0x38   : > { %v141_v7 = vadd.f32 1.0, %v140_v5  ;;  %v143_v8 = vmul.f32 %v303_v4, %v142_v6  ;;  %v145_v9 = vmul.f32 %v303_v4, %v140_v5 }
  0x3a   : > { %v144_v10 = vsel %vm139_vm0, %v141_v7, %v143_v8  ;;  %v146_v11 = vsel %vm139_vm0, %v145_v9, 2.0 }
  0x3b   : > { %v147_v12 = vadd.f32 %v146_v11, %v144_v10  ;;  %v155_v19 = vmul.f32 %v144_v10, %v134_v0 }
  0x3d   : > { %304 = vrcp.f32 %v147_v12 }
  0x43   : > { %v305_v13 = vpop.eup %304 }
  0x44   : > { %v149_v14 = vmul.f32 %v305_v13, %v147_v12 }
  0x46   : > { %v150_v15 = vsub.f32 2.0, %v149_v14 }
  0x48   : > { %v151_v16 = vmul.f32 %v305_v13, %v150_v15 }
  0x4a   : > { %v152_v17 = vmul.f32 %v151_v16, %v147_v12 }
  0x4c   : > { %v153_v18 = vsub.f32 2.0, %v152_v17 }
  0x4e   : > { %v154_v20 = vmul.f32 %v153_v18, %v151_v16 }
  0x50   : > { %v156_v21 = vmul.f32 %v155_v19, %v154_v20 }
  0x52   : > { %157 = vst [vmem:[%s133_s26] sm:$0xff] %v156_v21 }
  0x53   : > { %363 = shalt.err (!%p360_p4)
}
  0x54   : > { %258 = dma.vmem_to_hbm [thread:$0]  (%p464_p11), %s172_s27, 128, %s174_s28, %s159_s29  }
  0x55 PF: > { %s185_s13 = sand.u32 1, %s390_s6   ;;  %p548_p7 = scmp.ge.s32.totalorder %s402_s9, 2 }
  0x56   : > { %s186_s14 = scalar_lea.sflag [#allocation4], %s185_s13 }
  0x57   : > { %p265_p5 = pnand %p548_p7, %p468_p12 }
  0x59   : > { %p266_p8 = pneg %p265_p5 }
  0x5b   : > { %385 = dma.done.wait (%p266_p8), %s186_s14, 128  }
  0x5c   : > { %387 = vsyncadd (%p266_p8), %s186_s14, 4294967168  ;;  %p14_p10 = scmp.ge.s32.totalorder %s439_s12, 4   ;;  %s549_s6 = smov %s394_s7 }
  0x5d   : > { %s550_s7 = smov %s398_s8  ;;  %s551_s8 = smov %s451_s15 }
  0x5e   : > { %s552_s9 = smov %s439_s12  ;;  %16 = sbr.rel (!%p14_p10) target bundleno = 5 (0x5), region = 69 }
  0x63   :  { %192 = vsyncpa [#allocation3], 1 }
  0x64   :  { %194 = vsyncpa [#allocation3 + $0x1], 1 }
  0x65   :  { %195 = vsyncpa [#allocation4], 1 }
  0x66   :  { %197 = vsyncpa [#allocation4 + $0x1], 1 }

</bundles_post_ra>
